<compile_context>
chip_gen: v5e
topology: v5e:2x2
jax: 0.10.0
libtpu: 0.0.40
codegen_flags: <defaults>
</compile_context>

<pallas_src>
import jax
import jax.numpy as jnp
from jax.experimental import pallas as pl
from jax.experimental.pallas import tpu as pltpu


def _add3_kernel(a_ref, b_ref, c_ref, o_ref):
    # x959 = x958 + x943 ; x975 = x974 + x959
    o_ref[...] = c_ref[...] + (a_ref[...] + b_ref[...])


def _add3_impl(x958, x943, x974):
    orig_shape = x958.shape
    n = x958.size

    # Lane-dense 2D slab: (ceil(n/128), 128). For 1*384*7*7 = 18816 this is
    # exactly (147, 128) with no padding.
    lane = 128
    rows = pl.cdiv(n, lane)
    padded = rows * lane

    def to2d(x):
        flat = x.reshape(-1)
        if padded != n:
            flat = jnp.pad(flat, (0, padded - n))
        return flat.reshape(rows, lane)

    a = to2d(x958)
    b = to2d(x943)
    c = to2d(x974)

    vmem_spec = pl.BlockSpec(memory_space=pltpu.MemorySpace.VMEM)

    out = pl.pallas_call(
        _add3_kernel,
        out_shape=jax.ShapeDtypeStruct((rows, lane), x958.dtype),
        in_specs=[vmem_spec, vmem_spec, vmem_spec],
        out_specs=vmem_spec,
    )(a, b, c)

    if padded == n:
        # Exact fit: straight reshape back (bitcast under jit), no slice.
        return out.reshape(orig_shape)
    return out.reshape(-1)[:n].reshape(orig_shape)


# Single jit over the whole wrapper: reshapes become bitcasts, one device dispatch.
_add3_jit = jax.jit(_add3_impl)


def add3(x958, x943, x974):
    assert x958.shape == x943.shape == x974.shape
    assert x958.dtype == x943.dtype == x974.dtype
    return _add3_jit(x958, x943, x974)


if __name__ == "__main__":
    key = jax.random.PRNGKey(0)
    k1, k2, k3 = jax.random.split(key, 3)
    shape = (1, 384, 7, 7)
    x943 = jax.random.normal(k1, shape, dtype=jnp.float32)
    x958 = jax.random.normal(k2, shape, dtype=jnp.float32)
    x974 = jax.random.normal(k3, shape, dtype=jnp.float32)

    out = add3(x958, x943, x974)
    jax.block_until_ready(out)

    ref = x974 + (x958 + x943)
    assert out.shape == shape
    assert jnp.allclose(out, ref, atol=1e-6), "mismatch vs reference"
    print("KERNEL_OK")
</pallas_src>

<mosaic_0001>
module attributes {stable_mosaic.version = 11 : i64} {
  func.func @_add3_kernel(%arg0: memref<147x128xf32, #tpu.memory_space<vmem>>, %arg1: memref<147x128xf32, #tpu.memory_space<vmem>>, %arg2: memref<147x128xf32, #tpu.memory_space<vmem>>, %arg3: memref<147x128xf32, #tpu.memory_space<vmem>>) attributes {dimension_semantics = [], scalar_prefetch = 0 : i64, scratch_operands = 0 : i64, tpu.core_type = #tpu.core_type<tc>} {
    %c0 = arith.constant 0 : index
    %c0_0 = arith.constant 0 : index
    %0 = vector.load %arg2[%c0, %c0_0] : memref<147x128xf32, #tpu.memory_space<vmem>>, vector<147x128xf32>
    %c0_1 = arith.constant 0 : index
    %c0_2 = arith.constant 0 : index
    %1 = vector.load %arg0[%c0_1, %c0_2] : memref<147x128xf32, #tpu.memory_space<vmem>>, vector<147x128xf32>
    %c0_3 = arith.constant 0 : index
    %c0_4 = arith.constant 0 : index
    %2 = vector.load %arg1[%c0_3, %c0_4] : memref<147x128xf32, #tpu.memory_space<vmem>>, vector<147x128xf32>
    %3 = arith.addf %1, %2 : vector<147x128xf32>
    %4 = arith.addf %0, %3 : vector<147x128xf32>
    %c0_5 = arith.constant 0 : index
    %c0_6 = arith.constant 0 : index
    %5 = vector.load %arg3[%c0_5, %c0_6] : memref<147x128xf32, #tpu.memory_space<vmem>>, vector<147x128xf32>
    tpu.vector_store %arg3[%c0_5, %c0_6], %4 {strides = array<i32>} : memref<147x128xf32, #tpu.memory_space<vmem>>, vector<147x128xf32>,
    return
  }
}

</mosaic_0001>

<bundles_post_ra>
// kernel: _add3_impl.1
= control target key start
LH: loop header
LB: loop body
LE: loop exit
PB: predicated region body
PF: predicated region fallthrough
CT: control target
= control target key end

     0   :  { %s380_s0 = inlined_call_operand.vmem [shape: f32[147,128], index: 0, kind: input, shape index: {}]   ;;  %s381_s1 = inlined_call_operand.vmem [shape: f32[147,128], index: 1, kind: input, shape index: {}]   ;;  %s382_s2 = inlined_call_operand.vmem [shape: f32[147,128], index: 2, kind: input, shape index: {}]   ;;  %s383_s3 = inlined_call_operand.vmem [shape: f32[147,128], index: 3, kind: output, shape index: {}]  }
   0x1   :  { %v14_v0 = vld [vmem:[%s382_s2] sm:$0xff]  ;;  %v15_v4 = vld [vmem:[%s382_s2 + $0x8] sm:$0xff]  ;;  %v16_v8 = vld [vmem:[%s382_s2 + $0x10] sm:$0xff] }
   0x2   :  { %v33_v1 = vld [vmem:[%s380_s0] sm:$0xff]  ;;  %v34_v5 = vld [vmem:[%s380_s0 + $0x8] sm:$0xff]  ;;  %v35_v9 = vld [vmem:[%s380_s0 + $0x10] sm:$0xff] }
   0x3   :  { %v52_v2 = vld [vmem:[%s381_s1] sm:$0xff]  ;;  %v53_v6 = vld [vmem:[%s381_s1 + $0x8] sm:$0xff]  ;;  %v54_v10 = vld [vmem:[%s381_s1 + $0x10] sm:$0xff] }
   0x4   :  { %v71_v3 = vadd.f32 %v52_v2, %v33_v1  ;;  %v72_v7 = vadd.f32 %v53_v6, %v34_v5  ;;  %v73_v12 = vadd.f32 %v54_v10, %v35_v9  ;;  %v17_v13 = vld [vmem:[%s382_s2 + $0x18] sm:$0xff]  ;;  %v18_v18 = vld [vmem:[%s382_s2 + $0x20] sm:$0xff]  ;;  %v19_v23 = vld [vmem:[%s382_s2 + $0x28] sm:$0xff] }
   0x5   :  { %v36_v14 = vld [vmem:[%s380_s0 + $0x18] sm:$0xff]  ;;  %v37_v19 = vld [vmem:[%s380_s0 + $0x20] sm:$0xff]  ;;  %v38_v24 = vld [vmem:[%s380_s0 + $0x28] sm:$0xff] }
   0x6   :  { %v90_v11 = vadd.f32 %v71_v3, %v14_v0  ;;  %v55_v15 = vld [vmem:[%s381_s1 + $0x18] sm:$0xff]  ;;  %v91_v16 = vadd.f32 %v72_v7, %v15_v4  ;;  %v56_v20 = vld [vmem:[%s381_s1 + $0x20] sm:$0xff]  ;;  %v92_v21 = vadd.f32 %v73_v12, %v16_v8  ;;  %v57_v25 = vld [vmem:[%s381_s1 + $0x28] sm:$0xff] }
   0x7   :  { %v74_v17 = vadd.f32 %v55_v15, %v36_v14  ;;  %v75_v22 = vadd.f32 %v56_v20, %v37_v19  ;;  %v76_v27 = vadd.f32 %v57_v25, %v38_v24  ;;  %v20_v28 = vld [vmem:[%s382_s2 + $0x30] sm:$0xff]  ;;  %v21_v33 = vld [vmem:[%s382_s2 + $0x38] sm:$0xff]  ;;  %v22_v38 = vld [vmem:[%s382_s2 + $0x40] sm:$0xff] }
   0x8   :  { %109 = vst [vmem:[%s383_s3] sm:$0xff] %v90_v11  ;;  %v39_v29 = vld [vmem:[%s380_s0 + $0x30] sm:$0xff]  ;;  %v40_v34 = vld [vmem:[%s380_s0 + $0x38] sm:$0xff]  ;;  %v41_v39 = vld [vmem:[%s380_s0 + $0x40] sm:$0xff] }
   0x9   :  { %110 = vst [vmem:[%s383_s3 + $0x8] sm:$0xff] %v91_v16  ;;  %v93_v26 = vadd.f32 %v74_v17, %v17_v13  ;;  %v58_v30 = vld [vmem:[%s381_s1 + $0x30] sm:$0xff]  ;;  %v94_v31 = vadd.f32 %v75_v22, %v18_v18  ;;  %v59_v35 = vld [vmem:[%s381_s1 + $0x38] sm:$0xff]  ;;  %v95_v36 = vadd.f32 %v76_v27, %v19_v23  ;;  %v60_v40 = vld [vmem:[%s381_s1 + $0x40] sm:$0xff] }
   0xa   :  { %111 = vst [vmem:[%s383_s3 + $0x10] sm:$0xff] %v92_v21  ;;  %v77_v32 = vadd.f32 %v58_v30, %v39_v29  ;;  %v78_v37 = vadd.f32 %v59_v35, %v40_v34  ;;  %v79_v42 = vadd.f32 %v60_v40, %v41_v39  ;;  %v23_v43 = vld [vmem:[%s382_s2 + $0x48] sm:$0xff]  ;;  %v24_v48 = vld [vmem:[%s382_s2 + $0x50] sm:$0xff]  ;;  %v25_v53 = vld [vmem:[%s382_s2 + $0x58] sm:$0xff] }
   0xb   :  { %112 = vst [vmem:[%s383_s3 + $0x18] sm:$0xff] %v93_v26  ;;  %v42_v44 = vld [vmem:[%s380_s0 + $0x48] sm:$0xff]  ;;  %v43_v49 = vld [vmem:[%s380_s0 + $0x50] sm:$0xff]  ;;  %v44_v54 = vld [vmem:[%s380_s0 + $0x58] sm:$0xff] }
   0xc   :  { %113 = vst [vmem:[%s383_s3 + $0x20] sm:$0xff] %v94_v31  ;;  %v96_v41 = vadd.f32 %v77_v32, %v20_v28  ;;  %v61_v45 = vld [vmem:[%s381_s1 + $0x48] sm:$0xff]  ;;  %v97_v46 = vadd.f32 %v78_v37, %v21_v33  ;;  %v62_v50 = vld [vmem:[%s381_s1 + $0x50] sm:$0xff]  ;;  %v98_v51 = vadd.f32 %v79_v42, %v22_v38  ;;  %v63_v55 = vld [vmem:[%s381_s1 + $0x58] sm:$0xff] }
   0xd   :  { %114 = vst [vmem:[%s383_s3 + $0x28] sm:$0xff] %v95_v36  ;;  %v80_v47 = vadd.f32 %v61_v45, %v42_v44  ;;  %v81_v52 = vadd.f32 %v62_v50, %v43_v49  ;;  %v82_v57 = vadd.f32 %v63_v55, %v44_v54  ;;  %v26_v58 = vld [vmem:[%s382_s2 + $0x60] sm:$0xff]  ;;  %v27_v63 = vld [vmem:[%s382_s2 + $0x68] sm:$0xff]  ;;  %v28_v4 = vld [vmem:[%s382_s2 + $0x70] sm:$0xff] }
   0xe   :  { %115 = vst [vmem:[%s383_s3 + $0x30] sm:$0xff] %v96_v41  ;;  %v45_v59 = vld [vmem:[%s380_s0 + $0x60] sm:$0xff]  ;;  %v46_v0 = vld [vmem:[%s380_s0 + $0x68] sm:$0xff]  ;;  %v47_v5 = vld [vmem:[%s380_s0 + $0x70] sm:$0xff] }
   0xf   :  { %116 = vst [vmem:[%s383_s3 + $0x38] sm:$0xff] %v97_v46  ;;  %v99_v56 = vadd.f32 %v80_v47, %v23_v43  ;;  %v64_v60 = vld [vmem:[%s381_s1 + $0x60] sm:$0xff]  ;;  %v100_v61 = vadd.f32 %v81_v52, %v24_v48  ;;  %v65_v1 = vld [vmem:[%s381_s1 + $0x68] sm:$0xff]  ;;  %v101_v2 = vadd.f32 %v82_v57, %v25_v53  ;;  %v66_v6 = vld [vmem:[%s381_s1 + $0x70] sm:$0xff] }
  0x10   :  { %117 = vst [vmem:[%s383_s3 + $0x40] sm:$0xff] %v98_v51  ;;  %v83_v62 = vadd.f32 %v64_v60, %v45_v59  ;;  %v84_v3 = vadd.f32 %v65_v1, %v46_v0  ;;  %v85_v8 = vadd.f32 %v66_v6, %v47_v5  ;;  %v29_v9 = vld [vmem:[%s382_s2 + $0x78] sm:$0xff]  ;;  %v30_v14 = vld [vmem:[%s382_s2 + $0x80] sm:$0xff]  ;;  %v31_v19 = vld [vmem:[%s382_s2 + $0x88] sm:$0xff] }
  0x11   :  { %118 = vst [vmem:[%s383_s3 + $0x48] sm:$0xff] %v99_v56  ;;  %v48_v10 = vld [vmem:[%s380_s0 + $0x78] sm:$0xff]  ;;  %v49_v15 = vld [vmem:[%s380_s0 + $0x80] sm:$0xff]  ;;  %v50_v20 = vld [vmem:[%s380_s0 + $0x88] sm:$0xff] }
  0x12   :  { %119 = vst [vmem:[%s383_s3 + $0x50] sm:$0xff] %v100_v61  ;;  %v102_v7 = vadd.f32 %v83_v62, %v26_v58  ;;  %v67_v11 = vld [vmem:[%s381_s1 + $0x78] sm:$0xff]  ;;  %v103_v12 = vadd.f32 %v84_v3, %v27_v63  ;;  %v68_v16 = vld [vmem:[%s381_s1 + $0x80] sm:$0xff]  ;;  %v104_v17 = vadd.f32 %v85_v8, %v28_v4  ;;  %v69_v21 = vld [vmem:[%s381_s1 + $0x88] sm:$0xff] }
  0x13   :  { %120 = vst [vmem:[%s383_s3 + $0x58] sm:$0xff] %v101_v2  ;;  %v86_v13 = vadd.f32 %v67_v11, %v48_v10  ;;  %v87_v18 = vadd.f32 %v68_v16, %v49_v15  ;;  %v88_v23 = vadd.f32 %v69_v21, %v50_v20  ;;  %v51_v24 = vld [vmem:[%s380_s0 + $0x90] sm:$0x7] }
  0x14   :  { %121 = vst [vmem:[%s383_s3 + $0x60] sm:$0xff] %v102_v7  ;;  %v32_v26 = vld [vmem:[%s382_s2 + $0x90] sm:$0x7] }
  0x15   :  { %122 = vst [vmem:[%s383_s3 + $0x68] sm:$0xff] %v103_v12  ;;  %v105_v22 = vadd.f32 %v86_v13, %v29_v9  ;;  %v106_v25 = vadd.f32 %v87_v18, %v30_v14  ;;  %v70_v27 = vld [vmem:[%s381_s1 + $0x90] sm:$0x7]  ;;  %v107_v28 = vadd.f32 %v88_v23, %v31_v19 }
  0x16   :  { %123 = vst [vmem:[%s383_s3 + $0x70] sm:$0xff] %v104_v17  ;;  %v89_v29 = vadd.f32 %v70_v27, %v51_v24 }
  0x17   :  { %124 = vst [vmem:[%s383_s3 + $0x78] sm:$0xff] %v105_v22 }
  0x18   :  { %125 = vst [vmem:[%s383_s3 + $0x80] sm:$0xff] %v106_v25  ;;  %v108_v30 = vadd.f32 %v89_v29, %v32_v26 }
  0x19   :  { %126 = vst [vmem:[%s383_s3 + $0x88] sm:$0xff] %v107_v28 }
  0x1a   :  { %127 = vst [vmem:[%s383_s3 + $0x90] sm:$0x7] %v108_v30 }

</bundles_post_ra>
